<compile_context>
chip_gen: v7x
topology: tpu7x:2x2x1
jax: 0.10.0
libtpu: 0.0.40
codegen_flags: <defaults>
</compile_context>

<pallas_src>
import jax
import jax.numpy as jnp
from jax.experimental import pallas as pl
from jax.experimental.pallas import tpu as pltpu


def _round_up(x, m):
    return ((x + m - 1) // m) * m


# ----------------------------------------------------------------------------
# Fused kernel: conv (im2col matmul) + ReLU + GAP + BNNeck (+ classifier head)
# Grid: one step per image *group*, fully parallel.
# ----------------------------------------------------------------------------
def make_fused_kernel(training):
    """training=True additionally emits feats_map / feats_vec / logits."""

    def kernel(a_ref, w_ref, pool_ref, prow_ref, *rest):
        if training:
            wc_ref, bc_ref, bn_ref, logit_ref, vec_ref, fm_ref = rest
        else:
            (bn_ref,) = rest

        # ---- backbone: 3x3 conv as im2col matmul (bf16 in, f32 acc) + bias + ReLU
        fm = jnp.dot(a_ref[0], w_ref[...], preferred_element_type=jnp.float32)
        fm = jnp.maximum(fm + prow_ref[0:1, :], 0.0)                 # (Mg, Cp) f32

        # ---- pooling: GAP for the whole group via block-diag ones/HW matmul (MXU)
        vec = jnp.dot(pool_ref[...], fm,
                      preferred_element_type=jnp.float32)            # (imgs, Cp)

        # ---- head: BNNeck with folded inference stats (scale / shift)
        bn = vec * prow_ref[1:2, :] + prow_ref[2:3, :]                # (imgs, Cp)
        bn_ref[0] = bn

        if training:
            # TODO(synk): emit feats_map in bf16 if downstream tolerates it
            # (halves the only large per-step HBM writeback).
            fm_ref[0] = fm
            vec_ref[0] = vec
            logit_ref[0] = (
                jnp.dot(bn.astype(jnp.bfloat16), wc_ref[...],
                        preferred_element_type=jnp.float32)
                + bc_ref[...])

    return kernel


# ----------------------------------------------------------------------------
# Wrapper: layout transforms, lane padding, parameter plumbing
# ----------------------------------------------------------------------------
def base_reid_forward(x_nchw, params, training=False):
    """x_nchw: (N, Cin, H, W) float32. Returns bn_feats (eval) or dict (train)."""
    N, Cin, H, W = x_nchw.shape
    HW = H * W
    Cout = params["conv_w"].shape[-1]
    n_cls = params["cls_w"].shape[-1]

    # lane-dense padded sizes
    Cp = _round_up(Cout, 128)
    Pcls = _round_up(n_cls, 128)
    K = 9 * Cin
    Kp = _round_up(K, 128)       # lane-dense A last dim, bf16-packed w_mat sublanes

    # batch several images per grid step (amortize step overhead, MXU M >= ~512)
    imgs = max(1, min(N, max(1, 1024 // HW)))
    n_groups = -(-N // imgs)
    N_pad = n_groups * imgs
    Mg = imgs * HW

    # im2col glue in XLA (negligible at these toy shapes).
    # TODO(synk): at production ReID sizes move im2col in-kernel (shifted slices
    # on a resident padded-NHWC tile) to kill the 9x HBM read amplification;
    # the bf16 cast below already halves those bytes vs. the f32 baseline.
    x_nhwc = jnp.transpose(x_nchw, (0, 2, 3, 1))                     # NCHW -> NHWC
    xp = jnp.pad(x_nhwc, ((0, 0), (1, 1), (1, 1), (0, 0)))
    patches = jnp.concatenate(
        [xp[:, dh:dh + H, dw:dw + W, :] for dh in range(3) for dw in range(3)],
        axis=-1)                                                     # (N,H,W,9*Cin)
    A = patches.reshape(N * HW, K)
    A = jnp.pad(A, ((0, N_pad * HW - N * HW), (0, Kp - K)))
    A = A.reshape(n_groups, Mg, Kp).astype(jnp.bfloat16)

    # zero-padded parameters: padded channels compute exact zeros, sliced off below
    w_mat = jnp.pad(params["conv_w"].reshape(K, Cout),
                    ((0, Kp - K), (0, Cp - Cout))).astype(jnp.bfloat16)

    # block-diagonal mean-pooling LHS: (imgs, imgs*HW) with 1/HW on the diag blocks
    pool = jnp.kron(jnp.eye(imgs, dtype=jnp.float32),
                    jnp.full((1, HW), 1.0 / HW, jnp.float32))        # (imgs, Mg)

    # fold inference BN into scale/shift; pack per-channel rows into one array
    inv_std = jax.lax.rsqrt(params["bn_var"] + 1e-5)
    scale = params["bn_gamma"] * inv_std
    shift = params["bn_beta"] - params["bn_mean"] * scale
    prow = jnp.stack([
        jnp.pad(params["conv_b"], (0, Cp - Cout)),
        jnp.pad(scale, (0, Cp - Cout)),
        jnp.pad(shift, (0, Cp - Cout)),
    ], axis=0)                                                       # (3, Cp) f32

    in_specs = [
        pl.BlockSpec((1, Mg, Kp), lambda g: (g, 0, 0)),   # im2col rows, this group
        pl.BlockSpec((Kp, Cp), lambda g: (0, 0)),         # conv weight (resident)
        pl.BlockSpec((imgs, Mg), lambda g: (0, 0)),       # GAP pooling matrix
        pl.BlockSpec((3, Cp), lambda g: (0, 0)),          # conv bias / bn scale / shift
    ]
    inputs = [A, w_mat, pool, prow]

    bn_shape = jax.ShapeDtypeStruct((n_groups, imgs, Cp), jnp.float32)
    bn_spec = pl.BlockSpec((1, imgs, Cp), lambda g: (g, 0, 0))

    if training:
        cls_w = jnp.pad(params["cls_w"],
                        ((0, Cp - Cout), (0, Pcls - n_cls))).astype(jnp.bfloat16)
        cls_b = jnp.pad(params["cls_b"], (0, Pcls - n_cls)).reshape(1, Pcls)
        in_specs += [pl.BlockSpec((Cp, Pcls), lambda g: (0, 0)),     # classifier W
                     pl.BlockSpec((1, Pcls), lambda g: (0, 0))]      # classifier b
        inputs += [cls_w, cls_b]
        out_shape = (
            bn_shape,                                                          # bn_feats
            jax.ShapeDtypeStruct((n_groups, imgs, Pcls), jnp.float32),         # logits
            jax.ShapeDtypeStruct((n_groups, imgs, Cp), jnp.float32),           # feats_vec
            jax.ShapeDtypeStruct((n_groups, Mg, Cp), jnp.float32),             # feats_map
        )
        out_specs = (
            bn_spec,
            pl.BlockSpec((1, imgs, Pcls), lambda g: (g, 0, 0)),
            pl.BlockSpec((1, imgs, Cp), lambda g: (g, 0, 0)),
            pl.BlockSpec((1, Mg, Cp), lambda g: (g, 0, 0)),
        )
    else:
        out_shape = bn_shape
        out_specs = bn_spec

    outs = pl.pallas_call(
        make_fused_kernel(training),
        out_shape=out_shape,
        grid=(n_groups,),
        in_specs=in_specs,
        out_specs=out_specs,
        compiler_params=pltpu.CompilerParams(
            dimension_semantics=("parallel",)),   # groups independent (2 TCs on v7x)
        # TODO(synk): at production shapes set vmem_limit_bytes and add an HW/K
        # sub-tiling axis so each double-buffered tile stays <= ~8-12 MiB on
        # v7x's 64 MiB VMEM while keeping >= 512-row tiles on v5e/v6e.
    )(*inputs)

    if training:
        bn_p, logit_p, vec_p, fm_p = outs
        bn = bn_p.reshape(N_pad, Cp)[:N, :Cout]
        logits = logit_p.reshape(N_pad, Pcls)[:N, :n_cls]
        vec = vec_p.reshape(N_pad, Cp)[:N, :Cout]
        fm = fm_p.reshape(N_pad, HW, Cp)[:N, :, :Cout]
        feats_map = jnp.transpose(fm.reshape(N, H, W, Cout), (0, 3, 1, 2))
        return {"logits": logits, "bn_feats": bn,
                "feats_map": feats_map, "feats_vec": vec}

    # eval: disable_hash() -> test_feats == 'bn_feats'
    return outs.reshape(N_pad, Cp)[:N, :Cout]


# ----------------------------------------------------------------------------
# Pure-JAX reference (same module semantics) for correctness checking
# ----------------------------------------------------------------------------
def reference_forward(x_nchw, params):
    N, Cin, H, W = x_nchw.shape
    Cout = params["conv_w"].shape[-1]
    x_nhwc = jnp.transpose(x_nchw, (0, 2, 3, 1))
    xp = jnp.pad(x_nhwc, ((0, 0), (1, 1), (1, 1), (0, 0)))
    patches = jnp.concatenate(
        [xp[:, dh:dh + H, dw:dw + W, :] for dh in range(3) for dw in range(3)],
        axis=-1)
    A = patches.reshape(N * H * W, 9 * Cin)
    fm = jnp.maximum(A @ params["conv_w"].reshape(9 * Cin, Cout)
                     + params["conv_b"], 0.0)
    fm_img = fm.reshape(N, H * W, Cout)
    vec = jnp.mean(fm_img, axis=1)
    bn = ((vec - params["bn_mean"]) * jax.lax.rsqrt(params["bn_var"] + 1e-5)
          * params["bn_gamma"] + params["bn_beta"])
    logits = bn @ params["cls_w"] + params["cls_b"]
    feats_map = jnp.transpose(fm.reshape(N, H, W, Cout), (0, 3, 1, 2))
    return {"bn_feats": bn, "logits": logits, "feats_vec": vec,
            "feats_map": feats_map}


def make_params(key, cin=4, cout=32, n_cls=8):
    ks = jax.random.split(key, 8)
    scale = 0.1
    return {
        "conv_w": scale * jax.random.normal(ks[0], (3, 3, cin, cout), jnp.float32),
        "conv_b": scale * jax.random.normal(ks[1], (cout,), jnp.float32),
        "bn_gamma": 1.0 + scale * jax.random.normal(ks[2], (cout,), jnp.float32),
        "bn_beta": scale * jax.random.normal(ks[3], (cout,), jnp.float32),
        "bn_mean": scale * jax.random.normal(ks[4], (cout,), jnp.float32),
        "bn_var": jnp.abs(1.0 + scale * jax.random.normal(ks[5], (cout,), jnp.float32)),
        "cls_w": scale * jax.random.normal(ks[6], (cout, n_cls), jnp.float32),
        "cls_b": scale * jax.random.normal(ks[7], (n_cls,), jnp.float32),
    }


if __name__ == "__main__":
    key = jax.random.PRNGKey(0)
    k_x, k_p = jax.random.split(key)
    # small shapes consistent with the module: batch=2, channels=4, spatial=16
    x = jax.random.normal(k_x, (2, 4, 16, 16), jnp.float32)   # NCHW like PyTorch
    params = make_params(k_p, cin=4, cout=32, n_cls=8)

    ref = reference_forward(x, params)

    # eval path (module returns bn_feats)
    bn_eval = base_reid_forward(x, params, training=False)
    jax.block_until_ready(bn_eval)
    assert bn_eval.shape == (2, 32)
    assert jnp.allclose(bn_eval, ref["bn_feats"], atol=2e-2, rtol=2e-2)

    # training path (module returns the full result dict)
    res = base_reid_forward(x, params, training=True)
    jax.block_until_ready(res["logits"])
    assert res["feats_map"].shape == (2, 32, 16, 16)
    assert res["feats_vec"].shape == (2, 32)
    assert res["logits"].shape == (2, 8)
    assert jnp.allclose(res["bn_feats"], ref["bn_feats"], atol=2e-2, rtol=2e-2)
    assert jnp.allclose(res["logits"], ref["logits"], atol=2e-2, rtol=2e-2)
    assert jnp.allclose(res["feats_vec"], ref["feats_vec"], atol=2e-2, rtol=2e-2)
    assert jnp.allclose(res["feats_map"], ref["feats_map"], atol=2e-2, rtol=2e-2)

    print("KERNEL_OK")
</pallas_src>

<mosaic_0001>
module attributes {stable_mosaic.version = 11 : i64} {
  func.func @kernel(%arg0: i32, %arg1: memref<1x512x128xbf16, #tpu.memory_space<vmem>>, %arg2: memref<128x128xbf16, #tpu.memory_space<vmem>>, %arg3: memref<2x512xf32, #tpu.memory_space<vmem>>, %arg4: memref<3x128xf32, #tpu.memory_space<vmem>>, %arg5: memref<1x2x128xf32, #tpu.memory_space<vmem>>) attributes {dimension_semantics = [#tpu.dimension_semantics<parallel>], iteration_bounds = array<i64: 1>, scalar_prefetch = 0 : i64, scratch_operands = 0 : i64, tpu.core_type = #tpu.core_type<tc>, window_params = [{transform_indices = @transform_0, window_bounds = array<i64: 1, 512, 128>}, {pipeline_mode = #tpu.pipeline_mode<synchronous>, transform_indices = @transform_1, window_bounds = array<i64: 128, 128>}, {pipeline_mode = #tpu.pipeline_mode<synchronous>, transform_indices = @transform_2, window_bounds = array<i64: 2, 512>}, {pipeline_mode = #tpu.pipeline_mode<synchronous>, transform_indices = @transform_3, window_bounds = array<i64: 3, 128>}, {transform_indices = @transform_4, window_bounds = array<i64: 1, 2, 128>}]} {
    %c0 = arith.constant 0 : index
    %c0_0 = arith.constant 0 : index
    %c0_1 = arith.constant 0 : index
    %0 = vector.load %arg1[%c0, %c0_0, %c0_1] : memref<1x512x128xbf16, #tpu.memory_space<vmem>>, vector<1x512x128xbf16>
    %1 = vector.shape_cast %0 : vector<1x512x128xbf16> to vector<512x128xbf16>
    %c0_2 = arith.constant 0 : index
    %c0_3 = arith.constant 0 : index
    %2 = vector.load %arg2[%c0_2, %c0_3] : memref<128x128xbf16, #tpu.memory_space<vmem>>, vector<128x128xbf16>
    %cst = arith.constant dense<0.000000e+00> : vector<512x128xf32>
    %3 = tpu.matmul %1, %2, %cst {dimension_numbers = #tpu.dot_dimension_numbers<[1], [0], [0], [1], [0, 0, 1, 1], [], []>} : vector<512x128xbf16>, vector<128x128xbf16>, vector<512x128xf32> -> vector<512x128xf32>
    %c0_4 = arith.constant 0 : index
    %c0_5 = arith.constant 0 : index
    %4 = vector.load %arg4[%c0_4, %c0_5] : memref<3x128xf32, #tpu.memory_space<vmem>>, vector<1x128xf32>
    %5 = vector.broadcast %4 : vector<1x128xf32> to vector<512x128xf32>
    %6 = arith.addf %3, %5 : vector<512x128xf32>
    %cst_6 = arith.constant 0.000000e+00 : f32
    %7 = vector.broadcast %cst_6 : f32 to vector<512x128xf32>
    %8 = arith.maximumf %6, %7 : vector<512x128xf32>
    %c0_7 = arith.constant 0 : index
    %c0_8 = arith.constant 0 : index
    %9 = vector.load %arg3[%c0_7, %c0_8] : memref<2x512xf32, #tpu.memory_space<vmem>>, vector<2x512xf32>
    %cst_9 = arith.constant dense<0.000000e+00> : vector<2x128xf32>
    %10 = tpu.matmul %9, %8, %cst_9 {dimension_numbers = #tpu.dot_dimension_numbers<[1], [0], [0], [1], [0, 0, 1, 1], [], []>} : vector<2x512xf32>, vector<512x128xf32>, vector<2x128xf32> -> vector<2x128xf32>
    %c1 = arith.constant 1 : index
    %c0_10 = arith.constant 0 : index
    %11 = vector.load %arg4[%c1, %c0_10] : memref<3x128xf32, #tpu.memory_space<vmem>>, vector<1x128xf32>
    %12 = vector.broadcast %11 : vector<1x128xf32> to vector<2x128xf32>
    %13 = arith.mulf %10, %12 : vector<2x128xf32>
    %c2 = arith.constant 2 : index
    %c0_11 = arith.constant 0 : index
    %14 = vector.load %arg4[%c2, %c0_11] : memref<3x128xf32, #tpu.memory_space<vmem>>, vector<1x128xf32>
    %15 = vector.broadcast %14 : vector<1x128xf32> to vector<2x128xf32>
    %16 = arith.addf %13, %15 : vector<2x128xf32>
    %c0_12 = arith.constant 0 : index
    %c0_13 = arith.constant 0 : index
    %c0_14 = arith.constant 0 : index
    %17 = vector.load %arg5[%c0_12, %c0_13, %c0_14] : memref<1x2x128xf32, #tpu.memory_space<vmem>>, vector<1x2x128xf32>
    %18 = vector.shape_cast %17 : vector<1x2x128xf32> to vector<2x128xf32>
    %19 = vector.shape_cast %16 : vector<2x128xf32> to vector<1x2x128xf32>
    tpu.vector_store %arg5[%c0_12, %c0_13, %c0_14], %19 {strides = array<i32>} : memref<1x2x128xf32, #tpu.memory_space<vmem>>, vector<1x2x128xf32>,
    return
  }
  func.func @transform_0(%arg0: i32) -> (i32, i32, i32) {
    %c0_i32 = arith.constant 0 : i32
    %c0_i32_0 = arith.constant 0 : i32
    %c0_i32_1 = arith.constant 0 : i32
    return %arg0, %c0_i32, %c0_i32_0 : i32, i32, i32
  }
  func.func @transform_1(%arg0: i32) -> (i32, i32) {
    %c0_i32 = arith.constant 0 : i32
    %c0_i32_0 = arith.constant 0 : i32
    %c0_i32_1 = arith.constant 0 : i32
    return %c0_i32, %c0_i32_0 : i32, i32
  }
  func.func @transform_2(%arg0: i32) -> (i32, i32) {
    %c0_i32 = arith.constant 0 : i32
    %c0_i32_0 = arith.constant 0 : i32
    %c0_i32_1 = arith.constant 0 : i32
    return %c0_i32, %c0_i32_0 : i32, i32
  }
  func.func @transform_3(%arg0: i32) -> (i32, i32) {
    %c0_i32 = arith.constant 0 : i32
    %c0_i32_0 = arith.constant 0 : i32
    %c0_i32_1 = arith.constant 0 : i32
    return %c0_i32, %c0_i32_0 : i32, i32
  }
  func.func @transform_4(%arg0: i32) -> (i32, i32, i32) {
    %c0_i32 = arith.constant 0 : i32
    %c0_i32_0 = arith.constant 0 : i32
    %c0_i32_1 = arith.constant 0 : i32
    return %arg0, %c0_i32, %c0_i32_0 : i32, i32, i32
  }
}

</mosaic_0001>

<bundles_post_ra>
// kernel: tpu_custom_call.1
= control target key start
LH: loop header
LB: loop body
LE: loop exit
PB: predicated region body
PF: predicated region fallthrough
CT: control target
= control target key end

     0   :  { %9 = vsyncpa [#allocation3], 0  ;;  %s1609_s0 = inlined_call_operand.hbm [shape: bf16[1,512,128], index: 0, kind: input, shape index: {}]   ;;  %s1610_s1 = inlined_call_operand.hbm [shape: bf16[128,128], index: 1, kind: input, shape index: {}]   ;;  %s1611_s2 = inlined_call_operand.hbm [shape: f32[2,512], index: 2, kind: input, shape index: {}]   ;;  %s1612_s3 = inlined_call_operand.vmem [shape: f32[3,128], index: 3, kind: input, shape index: {}]   ;;  %s1613_s4 = inlined_call_operand.hbm [shape: f32[1,2,128], index: 4, kind: output, shape index: {}]  }
   0x1   :  { %10 = vsyncpa [#allocation6], 0 }
   0x2   :  { %11 = vsyncpa [#allocation4], 0  ;;  %s1383_s15 = smov [#allocation5]   ;;  %s1384_s17 = smov [#allocation2]  }
   0x3   :  { %s29_s16 = sshll.u32 %s1383_s15, 4  ;;  %s17_s18 = sshll.u32 %s1384_s17, 4  ;;  %s30_s16 = int_to_ptr.vmem [resolvable:$true] %s29_s16  ;;  %s1415_s18 = int_to_ptr.vmem [resolvable:$true] %s17_s18 }
   0x4   :  { %s1289_s21 = scalar_lea.hbm %s1610_s1, 1024 }
   0x5   :  { %p1290_p0 = scmp.ne.s32.totalorder %s1610_s1, %s1289_s21  ;;  %p1293_p1 = scmp.lt.u32.totalorder %s1289_s21, %s1610_s1 }
   0x7   :  { %p1295_p2 = pnand %p1293_p1, %p1290_p0 }
   0x9   :  { %1298 = shalt.err (!%p1295_p2)
}
   0xa   :  { %s1299_s26 = scalar_lea.vmem %s30_s16, 1024  ;;  %p1304_p4 = scmp.lt.s32.totalorder %s30_s16, %s30_s16 }
   0xb   :  { %p1300_p3 = scmp.ne.s32.totalorder %s30_s16, %s1299_s26  ;;  %p1305_p5 = scmp.lt.s32.totalorder %s1299_s26, %s1299_s26 }
   0xd   :  { %p1306_p6 = por %p1305_p5, %p1304_p4 }
   0xf   :  { %p1307_p7 = pnand %p1306_p6, %p1300_p3 }
  0x11   :  { %1310 = shalt.err (!%p1307_p7)
}
  0x12   :  { %s1385_s27 = smov 64   ;;  %s1386_s28 = smov 4  }
  0x13   :  { %35 = dma.hbm_to_vmem [thread:$0]  %s1610_s1, 1024, %s30_s16, [#allocation6], %s1385_s27, %s1385_s27, %s1386_s28  }
  0x14   :  { %s1311_s7 = scalar_lea.hbm %s1609_s0, 4096 }
  0x15   :  { %p1312_p8 = scmp.ne.s32.totalorder %s1609_s0, %s1311_s7  ;;  %p1315_p9 = scmp.lt.u32.totalorder %s1311_s7, %s1609_s0 }
  0x17   :  { %p1317_p10 = pnand %p1315_p9, %p1312_p8 }
  0x19   :  { %1320 = shalt.err (!%p1317_p10)
}
  0x1a   :  { %s1321_s12 = scalar_lea.vmem %s1415_s18, 4096  ;;  %p1326_p12 = scmp.lt.s32.totalorder %s1415_s18, %s1415_s18 }
  0x1b   :  { %p1322_p11 = scmp.ne.s32.totalorder %s1415_s18, %s1321_s12  ;;  %p1327_p13 = scmp.lt.s32.totalorder %s1321_s12, %s1321_s12 }
  0x1d   :  { %p1328_p0 = por %p1327_p13, %p1326_p12 }
  0x1f   :  { %p1329_p1 = pnand %p1328_p0, %p1322_p11 }
  0x21   :  { %1332 = shalt.err (!%p1329_p1)
}
  0x22   :  { %23 = dma.hbm_to_vmem [thread:$0]  %s1609_s0, 4096, %s1415_s18, [#allocation3], %s1385_s27, %s1385_s27, %s1386_s28  }
  0x23   :  { %s1387_s14 = smov [#allocation7]   ;;  %s1333_s19 = scalar_lea.hbm %s1611_s2, 128 }
  0x24   :  { %s42_s15 = sshll.u32 %s1387_s14, 4  ;;  %p1334_p2 = scmp.ne.s32.totalorder %s1611_s2, %s1333_s19  ;;  %s43_s15 = int_to_ptr.vmem [resolvable:$true] %s42_s15 }
  0x25   :  { %p1337_p3 = scmp.lt.u32.totalorder %s1333_s19, %s1611_s2 }
  0x27   :  { %p1339_p4 = pnand %p1337_p3, %p1334_p2 }
  0x29   :  { %1342 = shalt.err (!%p1339_p4)
}
  0x2a   :  { %s1343_s24 = scalar_lea.vmem %s43_s15, 128  ;;  %p1348_p6 = scmp.lt.s32.totalorder %s43_s15, %s43_s15 }
  0x2b   :  { %p1344_p5 = scmp.ne.s32.totalorder %s43_s15, %s1343_s24  ;;  %p1349_p7 = scmp.lt.s32.totalorder %s1343_s24, %s1343_s24 }
  0x2d   :  { %p1350_p8 = por %p1349_p7, %p1348_p6 }
  0x2f   :  { %p1351_p9 = pnand %p1350_p8, %p1344_p5 }
  0x31   :  { %1354 = shalt.err (!%p1351_p9)
}
  0x32   :  { %45 = dma.hbm_to_vmem [thread:$0]  %s1611_s2, 128, %s43_s15, [#allocation6]  }
  0x33   :  { %1377 = dma.done.wait [#allocation3], 4096  }
  0x34   :  { %1378 = vsyncadd [#allocation3], 4294963200 }
  0x35   :  { %1379 = dma.done.wait [#allocation6], 1152  }
  0x36   :  { %1380 = vsyncadd [#allocation6], 4294966144  ;;  %v1248_v0 = vld [vmem:[#allocation5] sm:$0xff]   ;;  %v1249_v1 = vld [vmem:[#allocation5 + $0x8] sm:$0xff]   ;;  %v1388_v40 = vmov 1983009808   ;;  %v742_v42 = vlaneseq }
  0x37   :  { %1081 = vmatprep.subr.bf16.mxu0 %v1248_v0  ;;  %1225 = vmatprep.subr.bf16.mxu1 %v1248_v0  ;;  %v1250_v2 = vld [vmem:[#allocation5 + $0x10] sm:$0xff]   ;;  %v1251_v3 = vld [vmem:[#allocation5 + $0x18] sm:$0xff]   ;;  %v1256_v4 = vld [vmem:[#allocation2] sm:$0xff]   ;;  %v740_v41 = vunpack.c.l.s4 %v1388_v40  ;;  %s1389_s30 = smov [#allocation8]  }
  0x38   :  { %1082 = vmatpush3.bf16.msra.mxu0 %v1248_v0  ;;  %1233 = vmatpush3.bf16.msra.mxu1 %v1248_v0  ;;  %v1252_v5 = vld [vmem:[#allocation5 + $0x20] sm:$0xff]   ;;  %v1253_v6 = vld [vmem:[#allocation5 + $0x28] sm:$0xff]   ;;  %v1254_v7 = vld [vmem:[#allocation5 + $0x30] sm:$0xff]   ;;  %v743_v44 = vshrl.u32 %v742_v42, 7  ;;  %s918_s5 = sshll.u32 %s1389_s30, 4  ;;  %s919_s5 = int_to_ptr.vmem [resolvable:$true] %s918_s5 }
  0x39   :  { %1083 = vmatprep.subr.bf16.mxu0 %v1249_v1  ;;  %1226 = vmatprep.subr.bf16.mxu1 %v1249_v1  ;;  %v1271_v8 = vld [vmem:[#allocation2 + $0xb0] sm:$0xff]   ;;  %v1255_v9 = vld [vmem:[#allocation5 + $0x38] sm:$0xff]   ;;  %v1257_v10 = vld [vmem:[#allocation2 + $0x8] sm:$0xff]   ;;  %v741_v43 = vunpack.c.0.s8 %v740_v41  ;;  %s1355_s6 = scalar_lea.vmem %s919_s5, 32  ;;  %p1360_p11 = scmp.lt.s32.totalorder %s919_s5, %s919_s5 }
  0x3a   :  { %1097 = vmatprep.mubr.bf16.mxu0 %v1256_v4  ;;  %1141 = vmatprep.mubr.bf16.mxu1 %v1271_v8  ;;  %v1258_v11 = vld [vmem:[#allocation2 + $0x10] sm:$0xff]   ;;  %v1273_v12 = vld [vmem:[#allocation2 + $0xb8] sm:$0xff]   ;;  %v1274_v13 = vld [vmem:[#allocation2 + $0xc0] sm:$0xff]   ;;  %p1356_p10 = scmp.ne.s32.totalorder %s919_s5, %s1355_s6  ;;  %p1361_p12 = scmp.lt.s32.totalorder %s1355_s6, %s1355_s6 }
  0x3b   :  { %v1259_v14 = vld [vmem:[#allocation2 + $0x18] sm:$0xff]   ;;  %v1260_v15 = vld [vmem:[#allocation2 + $0x20] sm:$0xff]   ;;  %v1276_v16 = vld [vmem:[#allocation2 + $0xc8] sm:$0xff]   ;;  %v744_v45 = vsub.s32 %v741_v43, %v743_v44 }
  0x3c   :  { %1084 = vmatpush3.bf16.msra.mxu0 %v1249_v1  ;;  %1234 = vmatpush3.bf16.msra.mxu1 %v1249_v1  ;;  %v1278_v17 = vld [vmem:[#allocation2 + $0xd0] sm:$0xff]   ;;  %v1261_v18 = vld [vmem:[#allocation2 + $0x28] sm:$0xff]   ;;  %v1280_v19 = vld [vmem:[#allocation2 + $0xd8] sm:$0xff]   ;;  %p1362_p13 = por %p1361_p12, %p1360_p11 }
  0x3d   :  { %1085 = vmatprep.subr.bf16.mxu0 %v1250_v2  ;;  %1227 = vmatprep.subr.bf16.mxu1 %v1250_v2  ;;  %v1262_v20 = vld [vmem:[#allocation2 + $0x30] sm:$0xff]   ;;  %v1282_v21 = vld [vmem:[#allocation2 + $0xe0] sm:$0xff]   ;;  %v1263_v22 = vld [vmem:[#allocation2 + $0x38] sm:$0xff]  }
  0x3e   :  { %v1284_v23 = vld [vmem:[#allocation2 + $0xe8] sm:$0xff]   ;;  %v1264_v24 = vld [vmem:[#allocation2 + $0x40] sm:$0xff]   ;;  %v1286_v25 = vld [vmem:[#allocation2 + $0xf0] sm:$0xff]   ;;  %p1363_p0 = pnand %p1362_p13, %p1356_p10 }
  0x3f   :  { %v1265_v26 = vld [vmem:[#allocation2 + $0x48] sm:$0xff]   ;;  %v1287_v27 = vld [vmem:[#allocation2 + $0xf8] sm:$0xff]   ;;  %v1266_v28 = vld [vmem:[#allocation2 + $0x50] sm:$0xff]  }
  0x40   :  { %1086 = vmatpush3.bf16.msra.mxu0 %v1250_v2  ;;  %1235 = vmatpush3.bf16.msra.mxu1 %v1250_v2  ;;  %v1267_v29 = vld [vmem:[#allocation2 + $0x58] sm:$0xff]   ;;  %v1268_v30 = vld [vmem:[#allocation2 + $0x60] sm:$0xff]   ;;  %v1269_v31 = vld [vmem:[#allocation2 + $0x68] sm:$0xff]  }
  0x41   :  { %1087 = vmatprep.subr.bf16.mxu0 %v1251_v3  ;;  %1228 = vmatprep.subr.bf16.mxu1 %v1251_v3  ;;  %v1270_v32 = vld [vmem:[#allocation2 + $0x70] sm:$0xff]   ;;  %v1272_v33 = vld [vmem:[#allocation2 + $0x78] sm:$0xff]   ;;  %v1275_v34 = vld [vmem:[#allocation2 + $0x80] sm:$0xff]  }
  0x42   :  { %v1277_v35 = vld [vmem:[#allocation2 + $0x88] sm:$0xff]   ;;  %v1279_v36 = vld [vmem:[#allocation2 + $0x90] sm:$0xff]   ;;  %v1281_v37 = vld [vmem:[#allocation2 + $0x98] sm:$0xff]  }
  0x43   :  { %v1283_v38 = vld [vmem:[#allocation2 + $0xa0] sm:$0xff]   ;;  %v1285_v39 = vld [vmem:[#allocation2 + $0xa8] sm:$0xff]  }
  0x44   :  { %1088 = vmatpush3.bf16.msra.mxu0 %v1251_v3  ;;  %1236 = vmatpush3.bf16.msra.mxu1 %v1251_v3  ;;  %v736_v46 = vld [vmem:[#allocation7] sm:$0xff] }
  0x45   :  { %1089 = vmatprep.subr.bf16.mxu0 %v1252_v5  ;;  %1229 = vmatprep.subr.bf16.mxu1 %v1252_v5  ;;  %v1458_v47 = vrot.slane %v736_v46, %v744_v45  ;;  %v738_v49 = vcombine.high %v736_v46, %v736_v46  ;;  %v1467_v51 = vld [vmem:[%s1612_s3] ss:$0 sm:$0xff] }
  0x47   :  { %v753_v48 = vcombine.high %v1458_v47, %v1458_v47  ;;  %v1462_v50 = vrot.slane %v738_v49, %v744_v45 }
  0x48   :  { %1090 = vmatpush3.bf16.msra.mxu0 %v1252_v5  ;;  %1237 = vmatpush3.bf16.msra.mxu1 %v1252_v5 }
  0x49   :  { %1091 = vmatprep.subr.bf16.mxu0 %v1253_v6  ;;  %1230 = vmatprep.subr.bf16.mxu1 %v1253_v6 }
  0x4c   :  { %1092 = vmatpush3.bf16.msra.mxu0 %v1253_v6  ;;  %1238 = vmatpush3.bf16.msra.mxu1 %v1253_v6 }
  0x4d   :  { %1093 = vmatprep.subr.bf16.mxu0 %v1254_v7  ;;  %1231 = vmatprep.subr.bf16.mxu1 %v1254_v7 }
  0x50   :  { %1094 = vmatpush3.bf16.msra.mxu0 %v1254_v7  ;;  %1239 = vmatpush3.bf16.msra.mxu1 %v1254_v7 }
  0x51   :  { %1095 = vmatprep.subr.bf16.mxu0 %v1255_v9  ;;  %1232 = vmatprep.subr.bf16.mxu1 %v1255_v9 }
  0x54   :  { %1096 = vmatpush3.bf16.msra.mxu0 %v1255_v9  ;;  %1240 = vmatpush3.bf16.msra.mxu1 %v1255_v9 }
  0x57   :  { %1098 = vmatmul.mubr.bf16.vlgmr.msra.gmra.mrb[0].mxu0 %v1257_v10  ;;  %1142 = vmatmul.mubr.bf16.vlgmr.msra.gmra.mrb[0].mxu1 %v1273_v12 }
  0x58   :  { %1101 = vmatprep.mubr.bf16.mxu0 %v1258_v11  ;;  %1145 = vmatprep.mubr.bf16.mxu1 %v1274_v13 }
  0x5f   :  { %1102 = vmatmul.mubr.bf16.gmra.mrb[4].mxu0 %v1259_v14  ;;  %1146 = vmatmul.mubr.bf16.gmra.mrb[4].mxu1 %v1276_v16 }
  0x60   :  { %1105 = vmatprep.mubr.bf16.mxu0 %v1260_v15  ;;  %1149 = vmatprep.mubr.bf16.mxu1 %v1278_v17 }
  0x67   :  { %1106 = vmatmul.mubr.bf16.gmra.mrb[8].mxu0 %v1261_v18  ;;  %1150 = vmatmul.mubr.bf16.gmra.mrb[8].mxu1 %v1280_v19 }
  0x68   :  { %1109 = vmatprep.mubr.bf16.mxu0 %v1262_v20  ;;  %1153 = vmatprep.mubr.bf16.mxu1 %v1282_v21 }
  0x6f   :  { %1110 = vmatmul.mubr.bf16.gmra.mrb[12].mxu0 %v1263_v22  ;;  %1154 = vmatmul.mubr.bf16.gmra.mrb[12].mxu1 %v1284_v23 }
  0x70   :  { %1113 = vmatprep.mubr.bf16.mxu0 %v1264_v24  ;;  %1157 = vmatprep.mubr.bf16.mxu1 %v1286_v25 }
  0x77   :  { %1114 = vmatmul.mubr.bf16.gmra.mrb[16].mxu0 %v1265_v26  ;;  %1158 = vmatmul.mubr.bf16.gmra.mrb[16].mxu1 %v1287_v27 }
  0x78   :  { %1117 = vmatprep.mubr.bf16.mxu0 %v1266_v28  ;;  %823 = vmatprep.mubr.f32.mxu1 %v753_v48 }
  0x7f   :  { %1118 = vmatmul.mubr.bf16.gmra.mrb[20].mxu0 %v1267_v29 }
  0x80   :  { %1121 = vmatprep.mubr.bf16.mxu0 %v1268_v30 }
  0x87   :  { %1122 = vmatmul.mubr.bf16.gmra.mrb[24].mxu0 %v1269_v31 }
  0x88   :  { %1125 = vmatprep.mubr.bf16.mxu0 %v1270_v32 }
  0x8f   :  { %1126 = vmatmul.mubr.bf16.gmra.mrb[28].mxu0 %v1272_v33 }
  0x90   :  { %1129 = vmatprep.mubr.bf16.mxu0 %v1275_v34 }
  0x97   :  { %1130 = vmatmul.mubr.bf16.gmra.mrb[32].mxu0 %v1277_v35 }
  0x98   :  { %1133 = vmatprep.mubr.bf16.mxu0 %v1279_v36 }
  0x9f   :  { %1134 = vmatmul.mubr.bf16.gmra.mrb[36].mxu0 %v1281_v37 }
  0xa0   :  { %1137 = vmatprep.mubr.bf16.mxu0 %v1283_v38 }
  0xa7   :  { %1138 = vmatmul.mubr.bf16.gmra.mrb[40].mxu0 %v1285_v39 }
 0x12a   :  { %v1099_v52 = vpop.f32.mrb[0].mxu0  ;;  %v1143_v53 = vpop.f32.mrb[0].mxu1 }
 0x12b   :  { %v426_v54 = vadd.f32 %v1099_v52, %v1467_v51  ;;  %v417_v55 = vpop.f32.mrb[1].mxu0  ;;  %v602_v56 = vadd.f32 %v1143_v53, %v1467_v51  ;;  %v593_v57 = vpop.f32.mrb[1].mxu1 }
 0x12c   :  { %v418_v58 = vadd.f32 %v1467_v51, %v417_v55  ;;  %v1100_v59 = vpop.f32.mrb[2].mxu0  ;;  %v594_v60 = vadd.f32 %v1467_v51, %v593_v57  ;;  %v1144_v61 = vpop.f32.mrb[2].mxu1 }
 0x12d   :  { %v429_v62 = vadd.f32 %v1100_v59, %v1467_v51  ;;  %v420_v63 = vpop.f32.mrb[3].mxu0  ;;  %v718_v0 = vmax.f32 %v602_v56, 0.0  ;;  %v605_v1 = vadd.f32 %v1144_v61, %v1467_v51  ;;  %v596_v2 = vpop.f32.mrb[3].mxu1  ;;  %v674_v6 = vmax.f32 %v426_v54, 0.0 }
 0x12e   :  { %v421_v3 = vadd.f32 %v1467_v51, %v420_v63  ;;  %v716_v4 = vmax.f32 %v594_v60, 0.0  ;;  %v597_v5 = vadd.f32 %v1467_v51, %v596_v2  ;;  %v672_v9 = vmax.f32 %v418_v58, 0.0 }
 0x12f   :  { %v675_v7 = vmax.f32 %v429_v62, 0.0  ;;  %v719_v8 = vmax.f32 %v605_v1, 0.0 }
 0x130   :  { %v673_v10 = vmax.f32 %v421_v3, 0.0  ;;  %v717_v11 = vmax.f32 %v597_v5, 0.0 }
 0x131   :  { %v1477_v12 = vpack.c.bf16 %v675_v7, %v674_v6  ;;  %v1479_v13 = vpack.c.bf16 %v719_v8, %v718_v0 }
 0x132   :  { %v1481_v14 = vpack.c.bf16 %v673_v10, %v672_v9  ;;  %v1103_v15 = vpop.f32.mrb[4].mxu0  ;;  %v1483_v16 = vpack.c.bf16 %v717_v11, %v716_v4  ;;  %v1147_v17 = vpop.f32.mrb[4].mxu1 }
 0x133   :  { %v442_v18 = vadd.f32 %v1103_v15, %v1467_v51  ;;  %v433_v19 = vpop.f32.mrb[5].mxu0  ;;  %v618_v20 = vadd.f32 %v1147_v17, %v1467_v51  ;;  %v609_v21 = vpop.f32.mrb[5].mxu1 }
 0x134   :  { %v434_v22 = vadd.f32 %v1467_v51, %v433_v19  ;;  %v1104_v23 = vpop.f32.mrb[6].mxu0  ;;  %v610_v24 = vadd.f32 %v1467_v51, %v609_v21  ;;  %v1148_v25 = vpop.f32.mrb[6].mxu1 }
 0x135   :  { %v445_v26 = vadd.f32 %v1104_v23, %v1467_v51  ;;  %v436_v27 = vpop.f32.mrb[7].mxu0  ;;  %v722_v28 = vmax.f32 %v618_v20, 0.0  ;;  %v621_v29 = vadd.f32 %v1148_v25, %v1467_v51  ;;  %v612_v30 = vpop.f32.mrb[7].mxu1  ;;  %v678_v34 = vmax.f32 %v442_v18, 0.0 }
 0x136   :  { %v437_v31 = vadd.f32 %v1467_v51, %v436_v27  ;;  %v720_v32 = vmax.f32 %v610_v24, 0.0  ;;  %v613_v33 = vadd.f32 %v1467_v51, %v612_v30  ;;  %v676_v37 = vmax.f32 %v434_v22, 0.0 }
 0x137   :  { %v679_v35 = vmax.f32 %v445_v26, 0.0  ;;  %v723_v36 = vmax.f32 %v621_v29, 0.0 }
 0x138   :  { %v677_v38 = vmax.f32 %v437_v31, 0.0  ;;  %v721_v39 = vmax.f32 %v613_v33, 0.0 }
 0x139   :  { %v1493_v40 = vpack.c.bf16 %v679_v35, %v678_v34  ;;  %v1495_v41 = vpack.c.bf16 %v723_v36, %v722_v28 }
 0x13a   :  { %v1497_v42 = vpack.c.bf16 %v677_v38, %v676_v37  ;;  %v1107_v43 = vpop.f32.mrb[8].mxu0  ;;  %v1499_v44 = vpack.c.bf16 %v721_v39, %v720_v32  ;;  %v1151_v45 = vpop.f32.mrb[8].mxu1 }
 0x13b   :  { %v458_v46 = vadd.f32 %v1107_v43, %v1467_v51  ;;  %v449_v48 = vpop.f32.mrb[9].mxu0  ;;  %v634_v49 = vadd.f32 %v1151_v45, %v1467_v51  ;;  %v625_v52 = vpop.f32.mrb[9].mxu1 }
 0x13c   :  { %v450_v53 = vadd.f32 %v1467_v51, %v449_v48  ;;  %v1108_v54 = vpop.f32.mrb[10].mxu0  ;;  %v626_v55 = vadd.f32 %v1467_v51, %v625_v52  ;;  %v1152_v56 = vpop.f32.mrb[10].mxu1 }
 0x13d   :  { %v461_v57 = vadd.f32 %v1108_v54, %v1467_v51  ;;  %v452_v58 = vpop.f32.mrb[11].mxu0  ;;  %v726_v59 = vmax.f32 %v634_v49, 0.0  ;;  %v637_v60 = vadd.f32 %v1152_v56, %v1467_v51  ;;  %v628_v61 = vpop.f32.mrb[11].mxu1  ;;  %v682_v1 = vmax.f32 %v458_v46, 0.0 }
 0x13e   :  { %v453_v62 = vadd.f32 %v1467_v51, %v452_v58  ;;  %v724_v63 = vmax.f32 %v626_v55, 0.0  ;;  %v629_v0 = vadd.f32 %v1467_v51, %v628_v61  ;;  %v680_v4 = vmax.f32 %v450_v53, 0.0 }
 0x13f   :  { %v683_v2 = vmax.f32 %v461_v57, 0.0  ;;  %v727_v3 = vmax.f32 %v637_v60, 0.0 }
 0x140   :  { %v681_v5 = vmax.f32 %v453_v62, 0.0  ;;  %v725_v6 = vmax.f32 %v629_v0, 0.0 }
 0x141   :  { %v1509_v7 = vpack.c.bf16 %v683_v2, %v682_v1  ;;  %v1511_v8 = vpack.c.bf16 %v727_v3, %v726_v59 }
 0x142   :  { %v1513_v9 = vpack.c.bf16 %v681_v5, %v680_v4  ;;  %v1111_v10 = vpop.f32.mrb[12].mxu0  ;;  %v1515_v11 = vpack.c.bf16 %v725_v6, %v724_v63  ;;  %v1155_v15 = vpop.f32.mrb[12].mxu1 }
 0x143   :  { %v474_v17 = vadd.f32 %v1111_v10, %v1467_v51  ;;  %v465_v18 = vpop.f32.mrb[13].mxu0  ;;  %v650_v19 = vadd.f32 %v1155_v15, %v1467_v51  ;;  %v641_v20 = vpop.f32.mrb[13].mxu1 }
 0x144   :  { %v466_v21 = vadd.f32 %v1467_v51, %v465_v18  ;;  %v1112_v22 = vpop.f32.mrb[14].mxu0  ;;  %v642_v23 = vadd.f32 %v1467_v51, %v641_v20  ;;  %v1156_v24 = vpop.f32.mrb[14].mxu1 }
 0x145   :  { %v477_v25 = vadd.f32 %v1112_v22, %v1467_v51  ;;  %v468_v26 = vpop.f32.mrb[15].mxu0  ;;  %v730_v27 = vmax.f32 %v650_v19, 0.0  ;;  %v653_v28 = vadd.f32 %v1156_v24, %v1467_v51  ;;  %v644_v29 = vpop.f32.mrb[15].mxu1  ;;  %v686_v33 = vmax.f32 %v474_v17, 0.0 }
 0x146   :  { %v469_v30 = vadd.f32 %v1467_v51, %v468_v26  ;;  %v728_v31 = vmax.f32 %v642_v23, 0.0  ;;  %v645_v32 = vadd.f32 %v1467_v51, %v644_v29  ;;  %v684_v36 = vmax.f32 %v466_v21, 0.0 }
 0x147   :  { %v687_v34 = vmax.f32 %v477_v25, 0.0  ;;  %v731_v35 = vmax.f32 %v653_v28, 0.0 }
 0x148   :  { %v685_v37 = vmax.f32 %v469_v30, 0.0  ;;  %v729_v38 = vmax.f32 %v645_v32, 0.0 }
 0x149   :  { %v1525_v39 = vpack.c.bf16 %v687_v34, %v686_v33  ;;  %v1527_v43 = vpack.c.bf16 %v731_v35, %v730_v27 }
 0x14a   :  { %v1529_v45 = vpack.c.bf16 %v685_v37, %v684_v36  ;;  %v1115_v46 = vpop.f32.mrb[16].mxu0  ;;  %v1531_v48 = vpack.c.bf16 %v729_v38, %v728_v31  ;;  %v1159_v49 = vpop.f32.mrb[16].mxu1 }
 0x14b   :  { %v490_v52 = vadd.f32 %v1115_v46, %v1467_v51  ;;  %v481_v53 = vpop.f32.mrb[17].mxu0  ;;  %v666_v54 = vadd.f32 %v1159_v49, %v1467_v51  ;;  %v657_v55 = vpop.f32.mrb[17].mxu1 }
 0x14c   :  { %v482_v56 = vadd.f32 %v1467_v51, %v481_v53  ;;  %v1116_v57 = vpop.f32.mrb[18].mxu0  ;;  %v658_v58 = vadd.f32 %v1467_v51, %v657_v55  ;;  %v1160_v59 = vpop.f32.mrb[18].mxu1 }
 0x14d   :  { %v493_v60 = vadd.f32 %v1116_v57, %v1467_v51  ;;  %v484_v61 = vpop.f32.mrb[19].mxu0  ;;  %v734_v62 = vmax.f32 %v666_v54, 0.0  ;;  %v669_v63 = vadd.f32 %v1160_v59, %v1467_v51  ;;  %v660_v0 = vpop.f32.mrb[19].mxu1  ;;  %v690_v4 = vmax.f32 %v490_v52, 0.0 }
 0x14e   :  { %v485_v1 = vadd.f32 %v1467_v51, %v484_v61  ;;  %v732_v2 = vmax.f32 %v658_v58, 0.0  ;;  %v661_v3 = vadd.f32 %v1467_v51, %v660_v0  ;;  %v688_v10 = vmax.f32 %v482_v56, 0.0 }
 0x14f   :  { %v691_v5 = vmax.f32 %v493_v60, 0.0  ;;  %v735_v6 = vmax.f32 %v669_v63, 0.0 }
 0x150   :  { %v689_v15 = vmax.f32 %v485_v1, 0.0  ;;  %v733_v17 = vmax.f32 %v661_v3, 0.0 }
 0x151   :  { %v1165_v18 = vpack.c.bf16 %v691_v5, %v690_v4  ;;  %v1541_v19 = vpack.c.bf16 %v735_v6, %v734_v62 }
 0x152   :  { %v1161_v20 = vpack.c.bf16 %v689_v15, %v688_v10  ;;  %v1119_v21 = vpop.f32.mrb[20].mxu0  ;;  %v1543_v22 = vpack.c.bf16 %v733_v17, %v732_v2 }
 0x153   :  { %v506_v23 = vadd.f32 %v1119_v21, %v1467_v51  ;;  %v497_v24 = vpop.f32.mrb[21].mxu0 }
 0x154   :  { %v498_v25 = vadd.f32 %v1467_v51, %v497_v24  ;;  %v1120_v26 = vpop.f32.mrb[22].mxu0  ;;  %1162 = vmatprep.subr.bf16.mxu1 %v1161_v20 }
 0x155   :  { %v509_v27 = vadd.f32 %v1120_v26, %v1467_v51  ;;  %v500_v28 = vpop.f32.mrb[23].mxu0  ;;  %1164 = vmatpush3.bf16.msra.mxu1 %v1481_v14  ;;  %v694_v30 = vmax.f32 %v506_v23, 0.0 }
 0x156   :  { %v501_v29 = vadd.f32 %v1467_v51, %v500_v28  ;;  %1166 = vmatprep.subr.bf16.mxu1 %v1165_v18  ;;  %v692_v32 = vmax.f32 %v498_v25, 0.0  ;;  %v754_v28 = vcombine.high %v1462_v50, %v1462_v50 }
 0x157   :  { %v695_v31 = vmax.f32 %v509_v27, 0.0 }
 0x158   :  { %v693_v33 = vmax.f32 %v501_v29, 0.0 }
 0x159   :  { %v1173_v34 = vpack.c.bf16 %v695_v31, %v694_v30  ;;  %1168 = vmatpush3.bf16.msra.mxu1 %v1477_v12 }
 0x15a   :  { %v1169_v35 = vpack.c.bf16 %v693_v33, %v692_v32  ;;  %v1123_v36 = vpop.f32.mrb[24].mxu0 }
 0x15b   :  { %v522_v37 = vadd.f32 %v1123_v36, %v1467_v51  ;;  %v513_v38 = vpop.f32.mrb[25].mxu0 }
 0x15c   :  { %v514_v46 = vadd.f32 %v1467_v51, %v513_v38  ;;  %v1124_v49 = vpop.f32.mrb[26].mxu0  ;;  %1170 = vmatprep.subr.bf16.mxu1 %v1169_v35 }
 0x15d   :  { %v525_v14 = vadd.f32 %v1124_v49, %v1467_v51  ;;  %v516_v52 = vpop.f32.mrb[27].mxu0  ;;  %1172 = vmatpush3.bf16.msra.mxu1 %v1497_v42  ;;  %v698_v54 = vmax.f32 %v522_v37, 0.0 }
 0x15e   :  { %v517_v53 = vadd.f32 %v1467_v51, %v516_v52  ;;  %1174 = vmatprep.subr.bf16.mxu1 %v1173_v34  ;;  %v696_v12 = vmax.f32 %v514_v46, 0.0 }
 0x15f   :  { %v699_v55 = vmax.f32 %v525_v14, 0.0 }
 0x160   :  { %v697_v56 = vmax.f32 %v517_v53, 0.0 }
 0x161   :  { %v1181_v57 = vpack.c.bf16 %v699_v55, %v698_v54  ;;  %1176 = vmatpush3.bf16.msra.mxu1 %v1493_v40 }
 0x162   :  { %v1177_v58 = vpack.c.bf16 %v697_v56, %v696_v12  ;;  %v1127_v59 = vpop.f32.mrb[28].mxu0 }
 0x163   :  { %v538_v60 = vadd.f32 %v1127_v59, %v1467_v51  ;;  %v529_v61 = vpop.f32.mrb[29].mxu0 }
 0x164   :  { %v530_v62 = vadd.f32 %v1467_v51, %v529_v61  ;;  %v1128_v63 = vpop.f32.mrb[30].mxu0  ;;  %1178 = vmatprep.subr.bf16.mxu1 %v1177_v58 }
 0x165   :  { %v541_v42 = vadd.f32 %v1128_v63, %v1467_v51  ;;  %v532_v0 = vpop.f32.mrb[31].mxu0  ;;  %1180 = vmatpush3.bf16.msra.mxu1 %v1513_v9  ;;  %v702_v2 = vmax.f32 %v538_v60, 0.0 }
 0x166   :  { %v533_v1 = vadd.f32 %v1467_v51, %v532_v0  ;;  %1182 = vmatprep.subr.bf16.mxu1 %v1181_v57  ;;  %v700_v40 = vmax.f32 %v530_v62, 0.0 }
 0x167   :  { %v703_v3 = vmax.f32 %v541_v42, 0.0 }
 0x168   :  { %v701_v4 = vmax.f32 %v533_v1, 0.0 }
 0x169   :  { %v1189_v5 = vpack.c.bf16 %v703_v3, %v702_v2  ;;  %1184 = vmatpush3.bf16.msra.mxu1 %v1509_v7 }
 0x16a   :  { %v1185_v6 = vpack.c.bf16 %v701_v4, %v700_v40  ;;  %v1131_v10 = vpop.f32.mrb[32].mxu0 }
 0x16b   :  { %v554_v15 = vadd.f32 %v1131_v10, %v1467_v51  ;;  %v545_v17 = vpop.f32.mrb[33].mxu0 }
 0x16c   :  { %v546_v18 = vadd.f32 %v1467_v51, %v545_v17  ;;  %1186 = vmatprep.subr.bf16.mxu1 %v1185_v6  ;;  %v1132_v20 = vpop.f32.mrb[34].mxu0 }
 0x16d   :  { %v706_v9 = vmax.f32 %v554_v15, 0.0  ;;  %v557_v21 = vadd.f32 %v1132_v20, %v1467_v51  ;;  %1188 = vmatpush3.bf16.msra.mxu1 %v1529_v45  ;;  %v548_v23 = vpop.f32.mrb[35].mxu0 }
 0x16e   :  { %v549_v24 = vadd.f32 %v1467_v51, %v548_v23  ;;  %1190 = vmatprep.subr.bf16.mxu1 %v1189_v5  ;;  %v704_v7 = vmax.f32 %v546_v18, 0.0 }
 0x16f   :  { %v707_v25 = vmax.f32 %v557_v21, 0.0 }
 0x170   :  { %v705_v26 = vmax.f32 %v549_v24, 0.0 }
 0x171   :  { %v1199_v27 = vpack.c.bf16 %v707_v25, %v706_v9  ;;  %1192 = vmatpush3.bf16.msra.mxu1 %v1525_v39 }
 0x172   :  { %v1195_v29 = vpack.c.bf16 %v705_v26, %v704_v7  ;;  %v1135_v30 = vpop.f32.mrb[36].mxu0  ;;  %1194 = vmatprep.subr.bf16.mxu1 %v1499_v44 }
 0x173   :  { %v570_v31 = vadd.f32 %v1135_v30, %v1467_v51  ;;  %v561_v45 = vpop.f32.mrb[37].mxu0 }
 0x174   :  { %v562_v32 = vadd.f32 %v1467_v51, %v561_v45  ;;  %v1136_v33 = vpop.f32.mrb[38].mxu0  ;;  %824 = vmatmul.mubr.f32.vlgmr.msra.gmra.mrb[20].mxu1 %v1458_v47 }
 0x175   :  { %v710_v34 = vmax.f32 %v570_v31, 0.0  ;;  %v573_v35 = vadd.f32 %v1136_v33, %v1467_v51  ;;  %1196 = vmatpush3.bf16.msra.mxu1 %v1195_v29  ;;  %v564_v39 = vpop.f32.mrb[39].mxu0  ;;  %893 = vmatprep.mubr.f32.mxu1 %v754_v28 }
 0x176   :  { %v565_v36 = vadd.f32 %v1467_v51, %v564_v39  ;;  %1198 = vmatprep.subr.bf16.mxu1 %v1495_v41  ;;  %v708_v44 = vmax.f32 %v562_v32, 0.0 }
 0x177   :  { %v711_v37 = vmax.f32 %v573_v35, 0.0 }
 0x178   :  { %v709_v38 = vmax.f32 %v565_v36, 0.0 }
 0x179   :  { %v1207_v46 = vpack.c.bf16 %v711_v37, %v710_v34  ;;  %1200 = vmatpush3.bf16.msra.mxu1 %v1199_v27 }
 0x17a   :  { %v1203_v49 = vpack.c.bf16 %v709_v38, %v708_v44  ;;  %v1139_v14 = vpop.f32.mrb[40].mxu0  ;;  %1202 = vmatprep.subr.bf16.mxu1 %v1515_v11 }
 0x17b   :  { %v586_v47 = vadd.f32 %v1139_v14, %v1467_v51  ;;  %v577_v52 = vpop.f32.mrb[41].mxu0 }
 0x17c   :  { %v578_v53 = vadd.f32 %v1467_v51, %v577_v52  ;;  %v1140_v54 = vpop.f32.mrb[42].mxu0 }
 0x17d   :  { %v714_v55 = vmax.f32 %v586_v47, 0.0  ;;  %v589_v12 = vadd.f32 %v1140_v54, %v1467_v51  ;;  %1204 = vmatpush3.bf16.msra.mxu1 %v1203_v49  ;;  %v580_v41 = vpop.f32.mrb[43].mxu0 }
 0x17e   :  { %v581_v56 = vadd.f32 %v1467_v51, %v580_v41  ;;  %1206 = vmatprep.subr.bf16.mxu1 %v1511_v8  ;;  %v712_v58 = vmax.f32 %v578_v53, 0.0 }
 0x17f   :  { %v715_v57 = vmax.f32 %v589_v12, 0.0 }
 0x180   :  { %v713_v59 = vmax.f32 %v581_v56, 0.0 }
 0x181   :  { %v1215_v60 = vpack.c.bf16 %v715_v57, %v714_v55  ;;  %1208 = vmatpush3.bf16.msra.mxu1 %v1207_v46 }
 0x182   :  { %v1211_v11 = vpack.c.bf16 %v713_v59, %v712_v58  ;;  %1210 = vmatprep.subr.bf16.mxu1 %v1531_v48 }
 0x185   :  { %1212 = vmatpush3.bf16.msra.mxu1 %v1211_v11 }
 0x186   :  { %1214 = vmatprep.subr.bf16.mxu1 %v1527_v43  ;;  %v969_v43 = vld [vmem:[%s1612_s3 + $0x1] ss:$0 sm:$0xff] }
 0x189   :  { %1216 = vmatpush3.bf16.msra.mxu1 %v1215_v60 }
 0x18a   :  { %1218 = vmatprep.subr.bf16.mxu1 %v1543_v22 }
 0x18d   :  { %1220 = vmatpush3.bf16.msra.mxu1 %v1483_v16  ;;  %v970_v16 = vld [vmem:[%s1612_s3 + $0x2] ss:$0 sm:$0xff] }
 0x18e   :  { %1222 = vmatprep.subr.bf16.mxu1 %v1541_v19 }
 0x191   :  { %1224 = vmatpush3.bf16.msra.mxu1 %v1479_v13 }
 0x194   :  { %894 = vmatmul.mubr.f32.vlgmr.msra.gmra.mrb[22].mxu1 %v1462_v50 }
 0x247   :  { %v1043_v51 = vpop.f32.mrb[20].mxu1 }
 0x248   :  { %v1044_v8 = vpop.f32.mrb[21].mxu1 }
 0x249   :  { %v1045_v61 = vadd.f32 %v1044_v8, %v1043_v51 }
 0x267   :  { %v1078_v62 = vpop.f32.mrb[22].mxu1 }
 0x268   :  { %v1079_v63 = vpop.f32.mrb[23].mxu1 }
 0x269   :  { %v1080_v48 = vadd.f32 %v1079_v63, %v1078_v62 }
 0x26b   :  { %v896_v42 = vadd.f32 %v1080_v48, %v1045_v61 }
 0x26d   :  { %v904_v13 = vmul.f32 %v969_v43, %v896_v42 }
 0x26f   :  { %v910_v19 = vadd.f32 %v970_v16, %v904_v13 }
 0x271   :  { %911 = vst [vmem:[#allocation8] sm:$0x3] %v910_v19 }
 0x272   :  { %1366 = shalt.err (!%p1363_p0)
}
 0x273   :  { %s1367_s9 = scalar_lea.hbm %s1613_s4, 32 }
 0x274   :  { %p1368_p1 = scmp.ne.s32.totalorder %s1613_s4, %s1367_s9  ;;  %p1371_p2 = scmp.lt.u32.totalorder %s1367_s9, %s1613_s4 }
 0x276   :  { %p1373_p3 = pnand %p1371_p2, %p1368_p1 }
 0x278   :  { %1376 = shalt.err (!%p1373_p3)
}
 0x279   :  { %921 = dma.vmem_to_hbm [thread:$0]  %s919_s5, 32, %s1613_s4, [#allocation4]  }
 0x27a   :  { %1381 = dma.done.wait [#allocation4], 32  }
 0x27b   :  { %1382 = vsyncadd [#allocation4], 4294967264 }
 0x27c   :  { %925 = vsyncpa [#allocation3], 1 }
 0x27d   :  { %926 = vsyncpa [#allocation6], 1 }
 0x27e   :  { %927 = vsyncpa [#allocation4], 1 }

</bundles_post_ra>
